<compile_context>
chip_gen: v6e
topology: v6e:2x2x1
jax: 0.10.0
libtpu: 0.0.40
codegen_flags: <defaults>
</compile_context>

<pallas_src>
import functools

import jax
import jax.numpy as jnp
from jax import lax
from jax.experimental import pallas as pl
from jax.experimental.pallas import tpu as pltpu

LANES = 128
SUBLANES = 8


def _default_num_splits():
    """2 on dual-TensorCore chips (v7x), else 1. Safe fallback: 1."""
    try:
        info = pltpu.get_tpu_info()
    except Exception:
        return 1
    for name in ("num_cores_per_chip", "tensorcores_per_chip",
                 "num_tensorcores", "num_cores"):
        v = getattr(info, name, None)
        if isinstance(v, int) and v > 0:
            return min(v, 2)
    return 1


def _mse_sum_kernel(x_ref, y_ref, o_ref, *, rows, tile_rows, chunk_rows,
                    blocks_per_split, ragged):
    k = pl.program_id(1)   # streaming/reduction axis ("arbitrary")

    @pl.when(k == 0)
    def _():
        o_ref[...] = jnp.zeros_like(o_ref)

    num_chunks = tile_rows // chunk_rows
    unroll = num_chunks <= 16

    def fused_sum(valid_rows=None):
        # Iota only emitted on the masked path (and hoisted out of the loop).
        if valid_rows is not None:
            row_ids = lax.broadcasted_iota(jnp.int32, (chunk_rows, LANES), 0)

        def body(i, acc):
            r0 = pl.multiple_of(i * chunk_rows, chunk_rows)
            d = (x_ref[pl.ds(r0, chunk_rows), :].astype(jnp.float32)
                 - y_ref[pl.ds(r0, chunk_rows), :].astype(jnp.float32))
            sq = d * d
            if valid_rows is not None:
                sq = jnp.where(row_ids + r0 < valid_rows, sq, jnp.float32(0.0))
            # Pure-VPU fold of the chunk into 8*128 partial sums.
            return acc + sq.reshape(chunk_rows // SUBLANES, SUBLANES,
                                    LANES).sum(axis=0)

        return lax.fori_loop(0, num_chunks, body,
                             jnp.zeros((SUBLANES, LANES), jnp.float32),
                             unroll=unroll)

    if not ragged:
        # Fast path only: no mask, no iota, no gating.
        o_ref[...] += fused_sum()
    else:
        p = pl.program_id(0)
        b = p * blocks_per_split + k          # logical (unclamped) block index
        valid = rows - b * tile_rows          # valid rows in this tile

        @pl.when(valid >= tile_rows)          # interior block: unmasked
        def _():
            o_ref[...] += fused_sum()

        @pl.when(jnp.logical_and(valid > 0, valid < tile_rows))
        def _():                              # boundary block: masked
            o_ref[...] += fused_sum(valid_rows=valid)
        # valid <= 0: clamped dummy block -> contributes nothing.


def mse_loss(x, label, *, tile_rows=8192, num_splits=None):
    """Mean squared error over all elements, like torch.nn.MSELoss()."""
    assert x.shape == label.shape, "MSELoss requires matching shapes"
    n = x.size

    out_dtype = jnp.result_type(x.dtype, label.dtype)
    if not jnp.issubdtype(out_dtype, jnp.floating):
        out_dtype = jnp.float32

    inv_n = 1.0 / float(n)   # exact double-precision reciprocal of the count

    xf = x.reshape(-1)
    yf = label.reshape(-1)

    n_tail = n % LANES
    n_main = n - n_tail

    # Too small for a (>=8, 128) slab: plain jnp (negligible data anyway).
    if n_main < SUBLANES * LANES:
        d = xf.astype(jnp.float32) - yf.astype(jnp.float32)
        return (jnp.sum(d * d) * jnp.float32(inv_n)).astype(out_dtype)

    tail_sum = None
    if n_tail:
        # TODO(synk): the prefix slice below costs one HBM copy of the prefix;
        # it is only taken when n is not a multiple of 128 (common NN shapes
        # take the zero-copy reshape path).
        xt = xf[n_main:].astype(jnp.float32)
        yt = yf[n_main:].astype(jnp.float32)
        tail_sum = jnp.sum((xt - yt) ** 2)
        xf = xf[:n_main]
        yf = yf[:n_main]

    rows = n_main // LANES
    x2 = xf.reshape(rows, LANES)
    y2 = yf.reshape(rows, LANES)

    # Tile: multiple of 8 sublanes, as large as requested, never > data.
    tile = max(SUBLANES, (min(tile_rows, rows) // SUBLANES) * SUBLANES)
    total_blocks = pl.cdiv(rows, tile)

    if num_splits is None:
        num_splits = _default_num_splits()
    ns = max(1, min(num_splits, total_blocks))
    # Guarantee every split's k==0 block is a real block.
    while ns > 1 and (ns - 1) * pl.cdiv(total_blocks, ns) >= total_blocks:
        ns -= 1
    k_steps = pl.cdiv(total_blocks, ns)
    last_block = total_blocks - 1
    ragged = (rows % tile != 0) or (ns * k_steps != total_blocks)

    # Inner chunk: largest of {64, 32, 16, 8} rows dividing the tile. Keeps
    # per-chunk live vregs small so nothing spills to VMEM.
    chunk = SUBLANES
    for c in (64, 32, 16):
        if tile % c == 0:
            chunk = c
            break

    def block_map(p, k):
        # Clamp dummy trailing steps in-bounds; kernel skips their compute.
        return (jnp.minimum(p * k_steps + k, last_block), 0)

    # VMEM budget: 2 inputs x 2 pipeline buffers x block bytes + headroom,
    # never below the 32 MiB default, capped at 48 MiB (slack on v7x's 64 MiB).
    block_bytes = tile * LANES * (x2.dtype.itemsize + y2.dtype.itemsize)
    vmem_limit = int(min(max(2 * block_bytes + (4 << 20), 32 << 20), 48 << 20))

    kernel = functools.partial(
        _mse_sum_kernel,
        rows=rows,
        tile_rows=tile,
        chunk_rows=chunk,
        blocks_per_split=k_steps,
        ragged=ragged,
    )

    partial = pl.pallas_call(
        kernel,
        out_shape=jax.ShapeDtypeStruct((ns * SUBLANES, LANES), jnp.float32),
        grid_spec=pltpu.PrefetchScalarGridSpec(
            num_scalar_prefetch=0,
            grid=(ns, k_steps),
            in_specs=[
                pl.BlockSpec((tile, LANES), block_map),
                pl.BlockSpec((tile, LANES), block_map),
            ],
            out_specs=pl.BlockSpec((SUBLANES, LANES), lambda p, k: (p, 0)),
        ),
        compiler_params=pltpu.CompilerParams(
            # TODO(synk): on v7x verify this "parallel" axis actually shards
            # across both TensorCores (else switch to pltpu.CORE_PARALLEL).
            dimension_semantics=("parallel", "arbitrary"),
            vmem_limit_bytes=vmem_limit,
        ),
    )(x2, y2)

    total = jnp.sum(partial)
    if tail_sum is not None:
        total = total + tail_sum
    return (total * jnp.float32(inv_n)).astype(out_dtype)


if __name__ == "__main__":
    key = jax.random.PRNGKey(0)
    kx, ky = jax.random.split(key)

    # Primary check: shapes consistent with the module's typical use
    # (n % 128 == 0 -> zero-copy fast path, no mask).
    x = jax.random.normal(kx, (2, 4, 16, 16), dtype=jnp.float32)
    label = jax.random.normal(ky, (2, 4, 16, 16), dtype=jnp.float32)
    loss = mse_loss(x, label)
    jax.block_until_ready(loss)
    ref = jnp.mean((x - label) ** 2)
    assert jnp.allclose(loss, ref, rtol=1e-5, atol=1e-6), (loss, ref)

    # Secondary check: awkward size + tiny tile + 2-way split to exercise the
    # wrapper-tail, gated-ragged-mask and dummy-block code paths.
    ka, kb = jax.random.split(ky)
    a = jax.random.normal(ka, (37, 130), dtype=jnp.float32)
    b = jax.random.normal(kb, (37, 130), dtype=jnp.float32)
    loss2 = mse_loss(a, b, tile_rows=24, num_splits=2)
    jax.block_until_ready(loss2)
    ref2 = jnp.mean((a - b) ** 2)
    assert jnp.allclose(loss2, ref2, rtol=1e-5, atol=1e-6), (loss2, ref2)

    # Tiny input: pure-jnp fallback path.
    kc, kd = jax.random.split(kb)
    c = jax.random.normal(kc, (3, 5), dtype=jnp.float32)
    d = jax.random.normal(kd, (3, 5), dtype=jnp.float32)
    loss3 = mse_loss(c, d)
    jax.block_until_ready(loss3)
    ref3 = jnp.mean((c - d) ** 2)
    assert jnp.allclose(loss3, ref3, rtol=1e-5, atol=1e-6), (loss3, ref3)

    print("KERNEL_OK")
</pallas_src>

<mosaic_0001>
module attributes {stable_mosaic.version = 11 : i64} {
  func.func @_mse_sum_kernel(%arg0: i32, %arg1: i32, %arg2: memref<16x128xf32, #tpu.memory_space<vmem>>, %arg3: memref<16x128xf32, #tpu.memory_space<vmem>>, %arg4: memref<8x128xf32, #tpu.memory_space<vmem>>) attributes {dimension_semantics = [#tpu.dimension_semantics<parallel>, #tpu.dimension_semantics<arbitrary>], iteration_bounds = array<i64: 1, 1>, scalar_prefetch = 0 : i64, scratch_operands = 0 : i64, tpu.core_type = #tpu.core_type<tc>, window_params = [{transform_indices = @transform_0, window_bounds = array<i64: 16, 128>}, {transform_indices = @transform_1, window_bounds = array<i64: 16, 128>}, {transform_indices = @transform_2, window_bounds = array<i64: 8, 128>}]} {
    %c0_i32 = arith.constant 0 : i32
    %0 = arith.cmpi eq, %arg1, %c0_i32 : i32
    %1 = arith.extui %0 : i1 to i32
    %c0_i32_0 = arith.constant 0 : i32
    %2 = arith.cmpi ne, %1, %c0_i32_0 : i32
    scf.if %2 {
      %cst_8 = arith.constant 0.000000e+00 : f32
      %18 = vector.broadcast %cst_8 : f32 to vector<8x128xf32>
      %c0_9 = arith.constant 0 : index
      %c0_10 = arith.constant 0 : index
      %19 = vector.load %arg4[%c0_9, %c0_10] : memref<8x128xf32, #tpu.memory_space<vmem>>, vector<8x128xf32>
      tpu.vector_store %arg4[%c0_9, %c0_10], %18 {strides = array<i32>} : memref<8x128xf32, #tpu.memory_space<vmem>>, vector<8x128xf32>,
    } else {
    }
    %c0 = arith.constant 0 : index
    %c0_1 = arith.constant 0 : index
    %3 = vector.load %arg4[%c0, %c0_1] : memref<8x128xf32, #tpu.memory_space<vmem>>, vector<8x128xf32>
    %cst = arith.constant 0.000000e+00 : f32
    %4 = vector.broadcast %cst : f32 to vector<8x128xf32>
    %c0_i32_2 = arith.constant 0 : i32
    %c16_i32 = arith.constant 16 : i32
    %5 = arith.muli %c0_i32_2, %c16_i32 : i32
    %6 = tpu.assume_multiple %5, 16 : i32
    %7 = arith.index_cast %6 : i32 to index
    %c0_3 = arith.constant 0 : index
    %8 = vector.load %arg2[%7, %c0_3] : memref<16x128xf32, #tpu.memory_space<vmem>>, vector<16x128xf32>
    %9 = arith.index_cast %6 : i32 to index
    %c0_4 = arith.constant 0 : index
    %10 = vector.load %arg3[%9, %c0_4] : memref<16x128xf32, #tpu.memory_space<vmem>>, vector<16x128xf32>
    %11 = arith.subf %8, %10 : vector<16x128xf32>
    %12 = arith.mulf %11, %11 : vector<16x128xf32>
    %13 = vector.shape_cast %12 : vector<16x128xf32> to vector<2x8x128xf32>
    %cst_5 = arith.constant dense<0.000000e+00> : vector<8x128xf32>
    %14 = vector.multi_reduction <add>, %13, %cst_5 [0] : vector<2x8x128xf32> to vector<8x128xf32>
    %15 = arith.addf %4, %14 : vector<8x128xf32>
    %c1_i32 = arith.constant 1 : i32
    %16 = arith.addf %3, %15 : vector<8x128xf32>
    %c0_6 = arith.constant 0 : index
    %c0_7 = arith.constant 0 : index
    %17 = vector.load %arg4[%c0_6, %c0_7] : memref<8x128xf32, #tpu.memory_space<vmem>>, vector<8x128xf32>
    tpu.vector_store %arg4[%c0_6, %c0_7], %16 {strides = array<i32>} : memref<8x128xf32, #tpu.memory_space<vmem>>, vector<8x128xf32>,
    return
  }
  func.func @transform_0(%arg0: i32, %arg1: i32) -> (i32, i32) {
    %c1_i32 = arith.constant 1 : i32
    %0 = arith.muli %arg0, %c1_i32 : i32
    %1 = arith.addi %0, %arg1 : i32
    %c0_i32 = arith.constant 0 : i32
    %2 = arith.minsi %1, %c0_i32 : i32
    %c0_i32_0 = arith.constant 0 : i32
    %c0_i32_1 = arith.constant 0 : i32
    return %2, %c0_i32_0 : i32, i32
  }
  func.func @transform_1(%arg0: i32, %arg1: i32) -> (i32, i32) {
    %c1_i32 = arith.constant 1 : i32
    %0 = arith.muli %arg0, %c1_i32 : i32
    %1 = arith.addi %0, %arg1 : i32
    %c0_i32 = arith.constant 0 : i32
    %2 = arith.minsi %1, %c0_i32 : i32
    %c0_i32_0 = arith.constant 0 : i32
    %c0_i32_1 = arith.constant 0 : i32
    return %2, %c0_i32_0 : i32, i32
  }
  func.func @transform_2(%arg0: i32, %arg1: i32) -> (i32, i32) {
    %c0_i32 = arith.constant 0 : i32
    %c0_i32_0 = arith.constant 0 : i32
    return %arg0, %c0_i32 : i32, i32
  }
}

</mosaic_0001>

<bundles_post_ra>
// kernel: tpu_custom_call.1
= control target key start
LH: loop header
LB: loop body
LE: loop exit
PB: predicated region body
PF: predicated region fallthrough
CT: control target
= control target key end

     0   :  { %7 = vsyncpa [#allocation3], 0  ;;  %s199_s0 = inlined_call_operand.hbm [shape: f32[16,128], index: 0, kind: input, shape index: {}]   ;;  %s200_s1 = inlined_call_operand.hbm [shape: f32[16,128], index: 1, kind: input, shape index: {}]   ;;  %s201_s2 = inlined_call_operand.hbm [shape: f32[8,128], index: 2, kind: output, shape index: {}]  }
   0x1   :  { %8 = vsyncpa [#allocation6], 0 }
   0x2   :  { %9 = vsyncpa [#allocation4], 0  ;;  %s170_s9 = smov [#allocation2]  }
   0x3   :  { %s21_s10 = sshll.u32 %s170_s9, 4  ;;  %s22_s10 = int_to_ptr.vmem [resolvable:$true] %s21_s10 }
   0x4   :  { %s112_s11 = scalar_lea.vmem %s22_s10, 256  ;;  %p117_p1 = scmp.lt.s32.totalorder %s22_s10, %s22_s10 }
   0x5   :  { %p113_p0 = scmp.ne.s32.totalorder %s22_s10, %s112_s11  ;;  %p118_p2 = scmp.lt.s32.totalorder %s112_s11, %s112_s11 }
   0x7   :  { %p119_p3 = por %p118_p2, %p117_p1 }
   0x9   :  { %p120_p4 = pnand %p119_p3, %p113_p0 }
   0xb   :  { %123 = shalt.err (!%p120_p4)
}
   0xc   :  { %s171_s12 = smov 128   ;;  %s172_s13 = smov 8  }
   0xd   :  { %27 = dma.hbm_to_vmem [thread:$0]  %s199_s0, 256, %s22_s10, [#allocation3], %s171_s12, %s171_s12, %s172_s13  }
   0xe   :  { %s173_s16 = smov [#allocation5]  }
   0xf   :  { %s39_s17 = sshll.u32 %s173_s16, 4  ;;  %s40_s17 = int_to_ptr.vmem [resolvable:$true] %s39_s17 }
  0x10   :  { %s132_s18 = scalar_lea.vmem %s40_s17, 256  ;;  %p137_p6 = scmp.lt.s32.totalorder %s40_s17, %s40_s17 }
  0x11   :  { %p133_p5 = scmp.ne.s32.totalorder %s40_s17, %s132_s18  ;;  %p138_p7 = scmp.lt.s32.totalorder %s132_s18, %s132_s18 }
  0x13   :  { %p139_p8 = por %p138_p7, %p137_p6 }
  0x15   :  { %p140_p9 = pnand %p139_p8, %p133_p5 }
  0x17   :  { %143 = shalt.err (!%p140_p9)
}
  0x18   :  { %45 = dma.hbm_to_vmem [thread:$0]  %s200_s1, 256, %s40_s17, [#allocation6], %s171_s12, %s171_s12, %s172_s13  }
  0x19   :  { %164 = dma.done.wait [#allocation3], 256  }
  0x1a   :  { %165 = vsyncadd [#allocation3], 4294967040 }
  0x1b   :  { %166 = dma.done.wait [#allocation6], 256  }
  0x1c   :  { %167 = vsyncadd [#allocation6], 4294967040  ;;  %v66_v0 = vld [vmem:[#allocation2] sm:$0xff]  ;;  %v67_v1 = vld [vmem:[#allocation2 + $0x8] sm:$0xff]  ;;  %s174_s0 = smov [#allocation7]  }
  0x1d   :  { %v68_v2 = vld [vmem:[#allocation5] sm:$0xff]  ;;  %v69_v3 = vld [vmem:[#allocation5 + $0x8] sm:$0xff]  ;;  %s84_s21 = sshll.u32 %s174_s0, 4  ;;  %s85_s21 = int_to_ptr.vmem [resolvable:$true] %s84_s21 }
  0x1e   :  { %v70_v4 = vsub.f32 %v66_v0, %v68_v2  ;;  %v71_v5 = vsub.f32 %v67_v1, %v69_v3  ;;  %s144_s22 = scalar_lea.vmem %s85_s21, 128  ;;  %p149_p11 = scmp.lt.s32.totalorder %s85_s21, %s85_s21 }
  0x1f   :  { %p145_p10 = scmp.ne.s32.totalorder %s85_s21, %s144_s22  ;;  %p150_p12 = scmp.lt.s32.totalorder %s144_s22, %s144_s22 }
  0x20   :  { %v72_v6 = vmul.f32 %v70_v4, %v70_v4  ;;  %v73_v7 = vmul.f32 %v71_v5, %v71_v5 }
  0x21   :  { %p151_p13 = por %p150_p12, %p149_p11 }
  0x22   :  { %v74_v8 = vadd.f32 %v73_v7, %v72_v6 }
  0x23   :  { %p152_p0 = pnand %p151_p13, %p145_p10 }
  0x24   :  { %77 = vst [vmem:[#allocation7] sm:$0xff] %v74_v8 }
  0x25   :  { %155 = shalt.err (!%p152_p0)
}
  0x26   :  { %87 = dma.vmem_to_hbm [thread:$0]  %s85_s21, 128, %s201_s2, [#allocation4]  }
  0x27   :  { %168 = dma.done.wait [#allocation4], 128  }
  0x28   :  { %169 = vsyncadd [#allocation4], 4294967168 }
  0x29   :  { %91 = vsyncpa [#allocation3], 1 }
  0x2a   :  { %92 = vsyncpa [#allocation6], 1 }
  0x2b   :  { %93 = vsyncpa [#allocation4], 1 }

</bundles_post_ra>
